<compile_context>
chip_gen: v6e
topology: v6e:2x2x1
jax: 0.10.0
libtpu: 0.0.40
codegen_flags: <defaults>
</compile_context>

<pallas_src>
import jax
import jax.numpy as jnp
from jax import lax
from jax.experimental import pallas as pl
from jax.experimental.pallas import tpu as pltpu

EPS = 1e-5  # nn.BatchNorm2d default


# --------------------------------------------------------------------------- kernel
def _make_kernel(H):
    """Kernel factory; H (rows per image) is baked in for the boundary masks."""

    def kernel(x_ref, w1_ref, b1_ref, w2_ref, b2_ref, out_ref):
        bf16 = jnp.bfloat16
        f32 = jnp.float32
        M = x_ref.shape[0]                                  # NB * H rows per block

        # per-image row index -> top / bottom boundary masks (zero H padding)
        row = lax.broadcasted_iota(jnp.int32, (M, 1), 0)
        h_in_img = row % H
        top = h_in_img == 0            # row has no row above it inside its image
        bot = h_in_img == (H - 1)      # row has no row below it inside its image

        def conv3x3(a, w_ref):
            # a: (M, K) f32 activations; w_ref: (3, K, Nout) bf16 banded weights
            # (dx taps + W padding + BN scale folded in).  dy shift via sublane
            # roll (XLU) + boundary mask; wrap-around rows are masked anyway.
            a_up = jnp.where(top, 0.0, pltpu.roll(a, shift=1, axis=0))      # a[i-1]
            a_dn = jnp.where(bot, 0.0, pltpu.roll(a, shift=M - 1, axis=0))  # a[i+1]
            acc = jnp.dot(a_up.astype(bf16), w_ref[0], preferred_element_type=f32)
            acc = acc + jnp.dot(a.astype(bf16), w_ref[1], preferred_element_type=f32)
            acc = acc + jnp.dot(a_dn.astype(bf16), w_ref[2], preferred_element_type=f32)
            return acc

        # conv1 + folded (bias + BN1 shift) + ReLU   (BN1 scale is inside w1)
        h = jnp.maximum(conv3x3(x_ref[...], w1_ref) + b1_ref[...], 0.0)
        # conv2 + folded (bias + BN2 shift) + ReLU
        y = jnp.maximum(conv3x3(h, w2_ref) + b2_ref[...], 0.0)
        out_ref[...] = y.astype(out_ref.dtype)              # (M, W*C_out) lane-dense

    return kernel


# --------------------------------------------------------------------------- helpers
def _fold_bn(conv_bias, gamma, beta, mean, var):
    scale = gamma / jnp.sqrt(var + EPS)
    shift = (conv_bias - mean) * scale + beta
    return scale.astype(jnp.float32), shift.astype(jnp.float32)


def _banded_weight(w_oihw, W, scale):
    """(C_out, C_in, 3, 3) -> (3, W*C_in, W*C_out) banded over the merged W*C lane
    axis, with the per-output-channel BN scale folded in.

    B[dy, w'*C_in + ci, w*C_out + co] = scale[co] * w[co, ci, dy, w'-w+1]
                                        if |w'-w| <= 1 else 0.
    The band structure encodes the dx taps and the zero padding along W.
    """
    c_out, c_in = w_oihw.shape[0], w_oihw.shape[1]
    wp = jnp.transpose(w_oihw, (2, 3, 1, 0)).astype(jnp.float32)   # [dy, dx, ci, co]
    wp = wp * scale[None, None, None, :]                            # fold BN scale
    wsrc = jnp.arange(W)[:, None]                                   # input column w'
    wdst = jnp.arange(W)[None, :]                                   # output column w
    dx = wsrc - wdst + 1                                            # (W, W)
    valid = (dx >= 0) & (dx <= 2)
    dxc = jnp.clip(dx, 0, 2)
    b = wp[:, dxc, :, :]                                            # (3, W, W, ci, co)
    b = jnp.where(valid[None, :, :, None, None], b, 0.0)
    b = jnp.transpose(b, (0, 1, 3, 2, 4)).reshape(3, W * c_in, W * c_out)
    return b.astype(jnp.bfloat16)


def _pick_nb(N, H, target_rows=128):
    """Images per grid step.  Keep >=2 'parallel' grid steps when N >= 2 (v7x has
    2 TensorCores); otherwise grow M = NB*H toward ~128 rows to amortize the
    ~0.35us per-step overhead on single-TC chips."""
    cap = max(1, N // 2) if N >= 2 else max(1, N)
    want = min(cap, max(1, target_rows // H))
    for nb in range(want, 0, -1):
        if N % nb == 0:
            return nb
    return 1


# --------------------------------------------------------------------------- prep (once per weight update)
def prepare_double_conv(params, W):
    """Hoisted per-weight preparation: banded weights with BN scale folded in,
    plus the tiled bias/BN-shift rows.  Call once; reuse across forwards."""
    (w1, cb1, g1, be1, m1, v1,
     w2, cb2, g2, be2, m2, v2) = params
    C_mid, C_out = w1.shape[0], w2.shape[0]

    s1, t1 = _fold_bn(cb1, g1, be1, m1, v1)
    s2, t2 = _fold_bn(cb2, g2, be2, m2, v2)
    b1w = _banded_weight(w1, W, s1)                       # (3, W*C_in,  W*C_mid) bf16
    b2w = _banded_weight(w2, W, s2)                       # (3, W*C_mid, W*C_out) bf16
    t1t = jnp.tile(t1, W).reshape(1, W * C_mid).astype(jnp.float32)
    t2t = jnp.tile(t2, W).reshape(1, W * C_out).astype(jnp.float32)
    return b1w, t1t, b2w, t2t


# --------------------------------------------------------------------------- wrapper (per forward)
def double_conv_pallas(x_nchw, prepared):
    b1w, t1t, b2w, t2t = prepared
    N, C_in, H, W = x_nchw.shape
    C_mid = b1w.shape[2] // W
    C_out = b2w.shape[2] // W

    NB = _pick_nb(N, H)
    M = NB * H

    # lane-merged layout: (N*H, W*C) -- channels fastest, then W, on the lane axis.
    # Kept in f32 so the in-kernel sublane roll / mask stays on 32-bit layout.
    x2d = jnp.transpose(x_nchw, (0, 2, 3, 1)).reshape(N * H, W * C_in).astype(jnp.float32)

    out2d = pl.pallas_call(
        _make_kernel(H),
        out_shape=jax.ShapeDtypeStruct((N * H, W * C_out), jnp.float32),
        grid=(N // NB,),
        in_specs=[
            pl.BlockSpec((M, W * C_in), lambda n: (n, 0)),
            pl.BlockSpec((3, W * C_in, W * C_mid), lambda n: (0, 0, 0)),
            pl.BlockSpec((1, W * C_mid), lambda n: (0, 0)),
            pl.BlockSpec((3, W * C_mid, W * C_out), lambda n: (0, 0, 0)),
            pl.BlockSpec((1, W * C_out), lambda n: (0, 0)),
        ],
        out_specs=pl.BlockSpec((M, W * C_out), lambda n: (n, 0)),
        compiler_params=pltpu.CompilerParams(dimension_semantics=("parallel",)),
    )(x2d, b1w, t1t, b2w, t2t)

    out = out2d.reshape(N, H, W, C_out)
    return jnp.transpose(out, (0, 3, 1, 2))               # back to NCHW


# --------------------------------------------------------------------------- reference
def double_conv_reference(x_nchw, params):
    (w1, cb1, g1, be1, m1, v1,
     w2, cb2, g2, be2, m2, v2) = params

    def block(x, w, cb, g, be, mu, var):
        y = lax.conv_general_dilated(
            x, w, window_strides=(1, 1), padding="SAME",
            dimension_numbers=("NCHW", "OIHW", "NCHW"))
        y = y + cb[None, :, None, None]
        y = (y - mu[None, :, None, None]) / jnp.sqrt(var[None, :, None, None] + EPS)
        y = y * g[None, :, None, None] + be[None, :, None, None]
        return jnp.maximum(y, 0.0)

    h = block(x_nchw, w1, cb1, g1, be1, m1, v1)
    return block(h, w2, cb2, g2, be2, m2, v2)


def make_params(key, in_channels, out_channels):
    ks = jax.random.split(key, 12)
    w1 = 0.1 * jax.random.normal(ks[0], (out_channels, in_channels, 3, 3), jnp.float32)
    cb1 = 0.1 * jax.random.normal(ks[1], (out_channels,), jnp.float32)
    g1 = 1.0 + 0.1 * jax.random.normal(ks[2], (out_channels,), jnp.float32)
    be1 = 0.1 * jax.random.normal(ks[3], (out_channels,), jnp.float32)
    m1 = 0.1 * jax.random.normal(ks[4], (out_channels,), jnp.float32)
    v1 = 0.5 + jnp.abs(jax.random.normal(ks[5], (out_channels,), jnp.float32))
    w2 = 0.1 * jax.random.normal(ks[6], (out_channels, out_channels, 3, 3), jnp.float32)
    cb2 = 0.1 * jax.random.normal(ks[7], (out_channels,), jnp.float32)
    g2 = 1.0 + 0.1 * jax.random.normal(ks[8], (out_channels,), jnp.float32)
    be2 = 0.1 * jax.random.normal(ks[9], (out_channels,), jnp.float32)
    m2 = 0.1 * jax.random.normal(ks[10], (out_channels,), jnp.float32)
    v2 = 0.5 + jnp.abs(jax.random.normal(ks[11], (out_channels,), jnp.float32))
    return (w1, cb1, g1, be1, m1, v1, w2, cb2, g2, be2, m2, v2)


if __name__ == "__main__":
    key = jax.random.PRNGKey(0)
    k_x, k_p = jax.random.split(key)

    N, C_in, C_out, H, W = 2, 4, 8, 16, 16
    x = jax.random.normal(k_x, (N, C_in, H, W), jnp.float32)  # PyTorch NCHW input
    params = make_params(k_p, C_in, C_out)

    # Per-weight prep hoisted out of the forward path (done once).
    prepared = prepare_double_conv(params, W)

    out = jax.block_until_ready(double_conv_pallas(x, prepared))
    ref = jax.block_until_ready(double_conv_reference(x, params))

    assert out.shape == (N, C_out, H, W)
    # Tolerance accounts for intentional bf16 MXU inputs (f32 accumulation) vs f32 reference.
    assert jnp.allclose(out, ref, atol=3e-2, rtol=3e-2), float(jnp.max(jnp.abs(out - ref)))

    print("KERNEL_OK")
</pallas_src>

<mosaic_0001>
module attributes {stable_mosaic.version = 11 : i64} {
  func.func @kernel(%arg0: i32, %arg1: memref<16x64xf32, #tpu.memory_space<vmem>>, %arg2: memref<3x64x128xbf16, #tpu.memory_space<vmem>>, %arg3: memref<1x128xf32, #tpu.memory_space<vmem>>, %arg4: memref<3x128x128xbf16, #tpu.memory_space<vmem>>, %arg5: memref<1x128xf32, #tpu.memory_space<vmem>>, %arg6: memref<16x128xf32, #tpu.memory_space<vmem>>) attributes {dimension_semantics = [#tpu.dimension_semantics<parallel>], iteration_bounds = array<i64: 2>, scalar_prefetch = 0 : i64, scratch_operands = 0 : i64, tpu.core_type = #tpu.core_type<tc>, window_params = [{transform_indices = @transform_0, window_bounds = array<i64: 16, 64>}, {pipeline_mode = #tpu.pipeline_mode<synchronous>, transform_indices = @transform_1, window_bounds = array<i64: 3, 64, 128>}, {pipeline_mode = #tpu.pipeline_mode<synchronous>, transform_indices = @transform_2, window_bounds = array<i64: 1, 128>}, {pipeline_mode = #tpu.pipeline_mode<synchronous>, transform_indices = @transform_3, window_bounds = array<i64: 3, 128, 128>}, {pipeline_mode = #tpu.pipeline_mode<synchronous>, transform_indices = @transform_4, window_bounds = array<i64: 1, 128>}, {transform_indices = @transform_5, window_bounds = array<i64: 16, 128>}]} {
    %0 = tpu.iota {dimensions = array<i32: 0>} : vector<16x1xi32>
    %c16_i32 = arith.constant 16 : i32
    %c0_i32 = arith.constant 0 : i32
    %1 = arith.cmpi eq, %c16_i32, %c0_i32 : i32
    %c1_i32 = arith.constant 1 : i32
    %2 = arith.select %1, %c1_i32, %c16_i32 : i32
    %3 = vector.broadcast %2 : i32 to vector<16x1xi32>
    %4 = arith.remsi %0, %3 : vector<16x1xi32>
    %c0_i32_0 = arith.constant 0 : i32
    %5 = vector.broadcast %c0_i32_0 : i32 to vector<16x1xi32>
    %6 = arith.cmpi ne, %4, %5 : vector<16x1xi32>
    %c0_i32_1 = arith.constant 0 : i32
    %7 = vector.broadcast %c0_i32_1 : i32 to vector<16x1xi32>
    %8 = arith.cmpi slt, %4, %7 : vector<16x1xi32>
    %c0_i32_2 = arith.constant 0 : i32
    %9 = arith.cmpi slt, %2, %c0_i32_2 : i32
    %10 = vector.broadcast %9 : i1 to vector<16x1xi1>
    %11 = vector.broadcast %10 : vector<16x1xi1> to vector<16x1xi1>
    %12 = arith.xori %8, %11 : vector<16x1xi1>
    %13 = arith.andi %12, %6 : vector<16x1xi1>
    %14 = vector.broadcast %2 : i32 to vector<16x1xi32>
    %15 = arith.addi %4, %14 : vector<16x1xi32>
    %16 = arith.select %13, %15, %4 : vector<16x1xi1>, vector<16x1xi32>
    %c0_i32_3 = arith.constant 0 : i32
    %17 = vector.broadcast %c0_i32_3 : i32 to vector<16x1xi32>
    %18 = arith.cmpi eq, %16, %17 : vector<16x1xi32>
    %c15_i32 = arith.constant 15 : i32
    %19 = vector.broadcast %c15_i32 : i32 to vector<16x1xi32>
    %20 = arith.cmpi eq, %16, %19 : vector<16x1xi32>
    %c0 = arith.constant 0 : index
    %c0_4 = arith.constant 0 : index
    %21 = vector.load %arg1[%c0, %c0_4] : memref<16x64xf32, #tpu.memory_space<vmem>>, vector<16x64xf32>
    %c1_i32_5 = arith.constant 1 : i32
    %22 = tpu.dynamic_rotate %21 by %c1_i32_5 dim 0 : vector<16x64xf32>, i32 -> vector<16x64xf32>
    %cst = arith.constant 0.000000e+00 : f32
    %23 = vector.shape_cast %18 : vector<16x1xi1> to vector<16x1xi1>
    %24 = vector.broadcast %23 : vector<16x1xi1> to vector<16x64xi1>
    %25 = vector.broadcast %cst : f32 to vector<16x64xf32>
    %26 = arith.select %24, %25, %22 : vector<16x64xi1>, vector<16x64xf32>
    %c15_i32_6 = arith.constant 15 : i32
    %27 = tpu.dynamic_rotate %21 by %c15_i32_6 dim 0 : vector<16x64xf32>, i32 -> vector<16x64xf32>
    %cst_7 = arith.constant 0.000000e+00 : f32
    %28 = vector.shape_cast %20 : vector<16x1xi1> to vector<16x1xi1>
    %29 = vector.broadcast %28 : vector<16x1xi1> to vector<16x64xi1>
    %30 = vector.broadcast %cst_7 : f32 to vector<16x64xf32>
    %31 = arith.select %29, %30, %27 : vector<16x64xi1>, vector<16x64xf32>
    %32 = arith.truncf %26 : vector<16x64xf32> to vector<16x64xbf16>
    %c0_8 = arith.constant 0 : index
    %c0_9 = arith.constant 0 : index
    %c0_10 = arith.constant 0 : index
    %33 = vector.load %arg2[%c0_8, %c0_9, %c0_10] : memref<3x64x128xbf16, #tpu.memory_space<vmem>>, vector<1x64x128xbf16>
    %34 = vector.shape_cast %33 : vector<1x64x128xbf16> to vector<64x128xbf16>
    %cst_11 = arith.constant dense<0.000000e+00> : vector<16x128xf32>
    %35 = tpu.matmul %32, %34, %cst_11 {dimension_numbers = #tpu.dot_dimension_numbers<[1], [0], [0], [1], [0, 0, 1, 1], [], []>} : vector<16x64xbf16>, vector<64x128xbf16>, vector<16x128xf32> -> vector<16x128xf32>
    %36 = arith.truncf %21 : vector<16x64xf32> to vector<16x64xbf16>
    %c1 = arith.constant 1 : index
    %c0_12 = arith.constant 0 : index
    %c0_13 = arith.constant 0 : index
    %37 = vector.load %arg2[%c1, %c0_12, %c0_13] : memref<3x64x128xbf16, #tpu.memory_space<vmem>>, vector<1x64x128xbf16>
    %38 = vector.shape_cast %37 : vector<1x64x128xbf16> to vector<64x128xbf16>
    %cst_14 = arith.constant dense<0.000000e+00> : vector<16x128xf32>
    %39 = tpu.matmul %36, %38, %cst_14 {dimension_numbers = #tpu.dot_dimension_numbers<[1], [0], [0], [1], [0, 0, 1, 1], [], []>} : vector<16x64xbf16>, vector<64x128xbf16>, vector<16x128xf32> -> vector<16x128xf32>
    %40 = arith.addf %35, %39 : vector<16x128xf32>
    %41 = arith.truncf %31 : vector<16x64xf32> to vector<16x64xbf16>
    %c2 = arith.constant 2 : index
    %c0_15 = arith.constant 0 : index
    %c0_16 = arith.constant 0 : index
    %42 = vector.load %arg2[%c2, %c0_15, %c0_16] : memref<3x64x128xbf16, #tpu.memory_space<vmem>>, vector<1x64x128xbf16>
    %43 = vector.shape_cast %42 : vector<1x64x128xbf16> to vector<64x128xbf16>
    %cst_17 = arith.constant dense<0.000000e+00> : vector<16x128xf32>
    %44 = tpu.matmul %41, %43, %cst_17 {dimension_numbers = #tpu.dot_dimension_numbers<[1], [0], [0], [1], [0, 0, 1, 1], [], []>} : vector<16x64xbf16>, vector<64x128xbf16>, vector<16x128xf32> -> vector<16x128xf32>
    %45 = arith.addf %40, %44 : vector<16x128xf32>
    %c0_18 = arith.constant 0 : index
    %c0_19 = arith.constant 0 : index
    %46 = vector.load %arg3[%c0_18, %c0_19] : memref<1x128xf32, #tpu.memory_space<vmem>>, vector<1x128xf32>
    %47 = vector.broadcast %46 : vector<1x128xf32> to vector<16x128xf32>
    %48 = arith.addf %45, %47 : vector<16x128xf32>
    %cst_20 = arith.constant 0.000000e+00 : f32
    %49 = vector.broadcast %cst_20 : f32 to vector<16x128xf32>
    %50 = arith.maximumf %48, %49 : vector<16x128xf32>
    %c1_i32_21 = arith.constant 1 : i32
    %51 = tpu.dynamic_rotate %50 by %c1_i32_21 dim 0 : vector<16x128xf32>, i32 -> vector<16x128xf32>
    %cst_22 = arith.constant 0.000000e+00 : f32
    %52 = vector.shape_cast %18 : vector<16x1xi1> to vector<16x1xi1>
    %53 = vector.broadcast %52 : vector<16x1xi1> to vector<16x128xi1>
    %54 = vector.broadcast %cst_22 : f32 to vector<16x128xf32>
    %55 = arith.select %53, %54, %51 : vector<16x128xi1>, vector<16x128xf32>
    %c15_i32_23 = arith.constant 15 : i32
    %56 = tpu.dynamic_rotate %50 by %c15_i32_23 dim 0 : vector<16x128xf32>, i32 -> vector<16x128xf32>
    %cst_24 = arith.constant 0.000000e+00 : f32
    %57 = vector.shape_cast %20 : vector<16x1xi1> to vector<16x1xi1>
    %58 = vector.broadcast %57 : vector<16x1xi1> to vector<16x128xi1>
    %59 = vector.broadcast %cst_24 : f32 to vector<16x128xf32>
    %60 = arith.select %58, %59, %56 : vector<16x128xi1>, vector<16x128xf32>
    %61 = arith.truncf %55 : vector<16x128xf32> to vector<16x128xbf16>
    %c0_25 = arith.constant 0 : index
    %c0_26 = arith.constant 0 : index
    %c0_27 = arith.constant 0 : index
    %62 = vector.load %arg4[%c0_25, %c0_26, %c0_27] : memref<3x128x128xbf16, #tpu.memory_space<vmem>>, vector<1x128x128xbf16>
    %63 = vector.shape_cast %62 : vector<1x128x128xbf16> to vector<128x128xbf16>
    %cst_28 = arith.constant dense<0.000000e+00> : vector<16x128xf32>
    %64 = tpu.matmul %61, %63, %cst_28 {dimension_numbers = #tpu.dot_dimension_numbers<[1], [0], [0], [1], [0, 0, 1, 1], [], []>} : vector<16x128xbf16>, vector<128x128xbf16>, vector<16x128xf32> -> vector<16x128xf32>
    %65 = arith.truncf %50 : vector<16x128xf32> to vector<16x128xbf16>
    %c1_29 = arith.constant 1 : index
    %c0_30 = arith.constant 0 : index
    %c0_31 = arith.constant 0 : index
    %66 = vector.load %arg4[%c1_29, %c0_30, %c0_31] : memref<3x128x128xbf16, #tpu.memory_space<vmem>>, vector<1x128x128xbf16>
    %67 = vector.shape_cast %66 : vector<1x128x128xbf16> to vector<128x128xbf16>
    %cst_32 = arith.constant dense<0.000000e+00> : vector<16x128xf32>
    %68 = tpu.matmul %65, %67, %cst_32 {dimension_numbers = #tpu.dot_dimension_numbers<[1], [0], [0], [1], [0, 0, 1, 1], [], []>} : vector<16x128xbf16>, vector<128x128xbf16>, vector<16x128xf32> -> vector<16x128xf32>
    %69 = arith.addf %64, %68 : vector<16x128xf32>
    %70 = arith.truncf %60 : vector<16x128xf32> to vector<16x128xbf16>
    %c2_33 = arith.constant 2 : index
    %c0_34 = arith.constant 0 : index
    %c0_35 = arith.constant 0 : index
    %71 = vector.load %arg4[%c2_33, %c0_34, %c0_35] : memref<3x128x128xbf16, #tpu.memory_space<vmem>>, vector<1x128x128xbf16>
    %72 = vector.shape_cast %71 : vector<1x128x128xbf16> to vector<128x128xbf16>
    %cst_36 = arith.constant dense<0.000000e+00> : vector<16x128xf32>
    %73 = tpu.matmul %70, %72, %cst_36 {dimension_numbers = #tpu.dot_dimension_numbers<[1], [0], [0], [1], [0, 0, 1, 1], [], []>} : vector<16x128xbf16>, vector<128x128xbf16>, vector<16x128xf32> -> vector<16x128xf32>
    %74 = arith.addf %69, %73 : vector<16x128xf32>
    %c0_37 = arith.constant 0 : index
    %c0_38 = arith.constant 0 : index
    %75 = vector.load %arg5[%c0_37, %c0_38] : memref<1x128xf32, #tpu.memory_space<vmem>>, vector<1x128xf32>
    %76 = vector.broadcast %75 : vector<1x128xf32> to vector<16x128xf32>
    %77 = arith.addf %74, %76 : vector<16x128xf32>
    %cst_39 = arith.constant 0.000000e+00 : f32
    %78 = vector.broadcast %cst_39 : f32 to vector<16x128xf32>
    %79 = arith.maximumf %77, %78 : vector<16x128xf32>
    %c0_40 = arith.constant 0 : index
    %c0_41 = arith.constant 0 : index
    %80 = vector.load %arg6[%c0_40, %c0_41] : memref<16x128xf32, #tpu.memory_space<vmem>>, vector<16x128xf32>
    tpu.vector_store %arg6[%c0_40, %c0_41], %79 {strides = array<i32>} : memref<16x128xf32, #tpu.memory_space<vmem>>, vector<16x128xf32>,
    return
  }
  func.func @transform_0(%arg0: i32) -> (i32, i32) {
    %c0_i32 = arith.constant 0 : i32
    %c0_i32_0 = arith.constant 0 : i32
    return %arg0, %c0_i32 : i32, i32
  }
  func.func @transform_1(%arg0: i32) -> (i32, i32, i32) {
    %c0_i32 = arith.constant 0 : i32
    %c0_i32_0 = arith.constant 0 : i32
    %c0_i32_1 = arith.constant 0 : i32
    %c0_i32_2 = arith.constant 0 : i32
    return %c0_i32, %c0_i32_0, %c0_i32_1 : i32, i32, i32
  }
  func.func @transform_2(%arg0: i32) -> (i32, i32) {
    %c0_i32 = arith.constant 0 : i32
    %c0_i32_0 = arith.constant 0 : i32
    %c0_i32_1 = arith.constant 0 : i32
    return %c0_i32, %c0_i32_0 : i32, i32
  }
  func.func @transform_3(%arg0: i32) -> (i32, i32, i32) {
    %c0_i32 = arith.constant 0 : i32
    %c0_i32_0 = arith.constant 0 : i32
    %c0_i32_1 = arith.constant 0 : i32
    %c0_i32_2 = arith.constant 0 : i32
    return %c0_i32, %c0_i32_0, %c0_i32_1 : i32, i32, i32
  }
  func.func @transform_4(%arg0: i32) -> (i32, i32) {
    %c0_i32 = arith.constant 0 : i32
    %c0_i32_0 = arith.constant 0 : i32
    %c0_i32_1 = arith.constant 0 : i32
    return %c0_i32, %c0_i32_0 : i32, i32
  }
  func.func @transform_5(%arg0: i32) -> (i32, i32) {
    %c0_i32 = arith.constant 0 : i32
    %c0_i32_0 = arith.constant 0 : i32
    return %arg0, %c0_i32 : i32, i32
  }
}

</mosaic_0001>

<bundles_post_ra>
// kernel: tpu_custom_call.1
= control target key start
LH: loop header
LB: loop body
LE: loop exit
PB: predicated region body
PF: predicated region fallthrough
CT: control target
= control target key end

     0   :  { %10 = vsyncpa [#allocation3], 0  ;;  %s1835_s0 = inlined_call_operand.hbm [shape: f32[32,64], index: 0, kind: input, shape index: {}]   ;;  %s1836_s1 = inlined_call_operand.hbm [shape: bf16[3,64,128], index: 1, kind: input, shape index: {}]   ;;  %s1837_s2 = inlined_call_operand.vmem [shape: f32[1,128], index: 2, kind: input, shape index: {}]   ;;  %s1838_s3 = inlined_call_operand.hbm [shape: bf16[3,128,128], index: 3, kind: input, shape index: {}]   ;;  %s1839_s4 = inlined_call_operand.vmem [shape: f32[1,128], index: 4, kind: input, shape index: {}]   ;;  %s1840_s5 = inlined_call_operand.hbm [shape: f32[32,128], index: 5, kind: output, shape index: {}]  }
   0x1   :  { %12 = vsyncpa [#allocation3 + $0x1], 0 }
   0x2   :  { %13 = vsyncpa [#allocation6], 0 }
   0x3   :  { %14 = vsyncpa [#allocation4], 0 }
   0x4   :  { %16 = vsyncpa [#allocation4 + $0x1], 0  ;;  %s1542_s18 = smov 0   ;;  %s1544_s19 = smov 0  }
   0x5   :  { %s1546_s20 = smov 0   ;;  %s1548_s21 = smov 0  }
   0x6 LB: > { %s1563_s22 = sadd.s32 4294967295, %s1497_s21   ;;  %s1030_s23 = sadd.s32 4294967294, %s1497_s21   ;;  %s1497_s21 = sphi %s1548_s21, %s1866_s21   ;;  %s1493_s20 = sphi %s1546_s20, %s1865_s20   ;;  %s1489_s19 = sphi %s1544_s19, %s1864_s19   ;;  %s1485_s18 = sphi %s1542_s18, %s1863_s18  }
   0x7   : > { %p42_p0 = scmp.ne.s32.totalorder %s1489_s19, %s1485_s18  ;;  %p1841_p1 = scmp.eq.s32.totalorder %s1563_s22, 0 }
   0x8   : > { %p156_p3 = scmp.eq.s32.totalorder %s1030_s23, 1  ;;  %p1031_p5 = scmp.ge.s32.totalorder %s1497_s21, 1 }
   0x9   : > { %p1572_p4 = por %p1841_p1, %p42_p0  ;;  %p163_p7 = scmp.lt.s32.totalorder %s1497_s21, 3 }
   0xa   : > { %p1577_p6 = por %p156_p3, %p42_p0  ;;  %s1499_s27 = smov [#allocation5]  }
   0xb   : > { %s1845_s24 = scalar_select %p1572_p4, 1, 0 }
   0xc   : > { %s1846_s25 = scalar_select %p1577_p6, 1, 0 }
   0xd   : > { %p1582_p8 = pnand %p1031_p5, %p163_p7  ;;  %s175_s28 = sshll.u32 %s1499_s27, 4  ;;  %s176_s28 = int_to_ptr.vmem [resolvable:$true] %s175_s28 }
   0xe   : > { %s1500_s30 = smov [#allocation7]   ;;  %s1360_s7 = scalar_lea.vmem %s176_s28, 1536 }
   0xf   : > { %s1847_s26 = scalar_select %p1582_p8, 1, 0 }
  0x10   : > { %p1249_p9 = pneg %p1582_p8  ;;  %s191_s6 = sshll.u32 %s1500_s30, 4  ;;  %s192_s6 = int_to_ptr.vmem [resolvable:$true] %s191_s6 }
  0x11   : > { %p1361_p13 = scmp.ne.s32.totalorder %s176_s28, %s1360_s7  ;;  %p1368_p5 = scmp.lt.s32.totalorder %s176_s28, %s176_s28 }
  0x12   : > { %p1591_p11 = pnand %p1249_p9, %p1841_p1  ;;  %p1369_p7 = scmp.lt.s32.totalorder %s1360_s7, %s1360_s7 }
  0x14   : > { %p1351_p12 = pneg %p1591_p11  ;;  %p1370_p10 = por %p1369_p7, %p1368_p5 }
  0x16   : > { %p1363_p0 = pnand %p1361_p13, %p1351_p12 }
  0x18   : > { %p1364_p3 = pneg %p1363_p0 }
  0x1a   : > { %p1371_p9 = pnand %p1370_p10, %p1364_p3 }
  0x1c   : > { %1374 = shalt.err (!%p1371_p9)
}
  0x1d   : > { %s1501_s8 = smov 64   ;;  %s1502_s9 = smov 4  }
  0x1e   : > { %1252 = dma.hbm_to_vmem [thread:$0]  (!%p1591_p11), %s1836_s1, 1536, %s176_s28, [#allocation6], %s1501_s8, %s1501_s8, %s1502_s9  }
  0x1f   : > { %s1386_s12 = scalar_lea.vmem %s192_s6, 3072  ;;  %p1394_p2 = scmp.lt.s32.totalorder %s192_s6, %s192_s6 }
  0x20   : > { %p1387_p1 = scmp.ne.s32.totalorder %s192_s6, %s1386_s12  ;;  %p1395_p6 = scmp.lt.s32.totalorder %s1386_s12, %s1386_s12 }
  0x22   : > { %p1389_p13 = pnand %p1387_p1, %p1351_p12  ;;  %p1396_p5 = por %p1395_p6, %p1394_p2 }
  0x24   : > { %p1390_p0 = pneg %p1389_p13 }
  0x26   : > { %p1397_p10 = pnand %p1396_p5, %p1390_p0 }
  0x28   : > { %1400 = shalt.err (!%p1397_p10)
}
  0x29   : > { %1255 = dma.hbm_to_vmem [thread:$0]  (!%p1591_p11), %s1838_s3, 3072, %s192_s6, [#allocation6], %s1501_s8, %s1501_s8, %s1502_s9  }
  0x2a   : > { %s1614_s15 = sadd.s32 1, %s1497_s21   ;;  %s29_s16 = sadd.s32 1, %s1493_s20 }
  0x2b   : > { %s26_s17 = ssub.s32 %s1497_s21, %s1614_s15  ;;  %p36_p1 = scmp.ne.s32.totalorder %s1493_s20, %s1489_s19 }
  0x2c   : > { %p27_p2 = scmp.eq.s32.totalorder %s26_s17, 0  ;;  %p37_p6 = scmp.eq.s32.totalorder %s1497_s21, 0 }
  0x2d   : > { %p1849_p12 = scmp.eq.s32.totalorder %s1563_s22, 1  ;;  %p1266_p7 = scmp.lt.s32.totalorder %s1497_s21, 2 }
  0x2e   : > { %s1630_s27 = scalar_select %p27_p2, %s1493_s20, %s29_s16  }
  0x2f   : > { %p1624_p3 = por %p1849_p12, %p36_p1  ;;  %p38_p9 = por %p37_p6, %p36_p1 }
  0x30   : > { %s208_s28 = sand.u32 1, %s1493_s20   ;;  %s1097_s30 = sshll.u32 %s1497_s21, 8 }
  0x31   : > { %s1850_s23 = scalar_select %p1624_p3, 1, 0 }
  0x32   : > { %s1035_s29 = sshll.u32 %s208_s28, 4  ;;  %s1637_s8 = scalar_lea.hbm %s1835_s0, %s1097_s30 }
  0x33   : > { %s212_s9 = scalar_lea.vmem [#allocation2], %s1035_s29  ;;  %p1641_p11 = pnand %p1266_p7, %p38_p9 }
  0x34   : > { %s219_s10 = sshll.u32 %s212_s9, 4  ;;  %s1645_s12 = scalar_lea.sflag [#allocation3], %s208_s28  ;;  %s1639_s10 = int_to_ptr.vmem [resolvable:$true] %s219_s10 }
  0x35   : > { %s1401_s13 = scalar_lea.hbm %s1637_s8, 256  ;;  %p1403_p0 = pneg %p1641_p11 }
  0x36   : > { %p1402_p13 = scmp.ne.s32.totalorder %s1637_s8, %s1401_s13  ;;  %s1406_s17 = scalar_lea.hbm %s1835_s0, 512 }
  0x37   : > { %p1407_p1 = scmp.lt.s32.totalorder %s1637_s8, %s1835_s0  ;;  %p1408_p2 = scmp.lt.s32.totalorder %s1406_s17, %s1401_s13 }
  0x38   : > { %p1404_p5 = pnand %p1403_p0, %p1402_p13 }
  0x39   : > { %p1409_p6 = por %p1408_p2, %p1407_p1 }
  0x3a   : > { %p1405_p10 = pneg %p1404_p5 }
  0x3c   : > { %p1410_p12 = pnand %p1409_p6, %p1405_p10 }
  0x3e   : > { %1413 = shalt.err (!%p1410_p12)
}
  0x3f   : > { %s1414_s28 = scalar_lea.vmem %s1639_s10, 256  ;;  %s1503_s6 = smov [#allocation2]  }
  0x40   : > { %p1415_p7 = scmp.ne.s32.totalorder %s1639_s10, %s1414_s28  ;;  %s1419_s7 = sshll.u32 %s1503_s6, 4  ;;  %s1420_s7 = int_to_ptr.vmem [resolvable:$false] %s1419_s7 }
  0x41   : > { %s1421_s9 = scalar_lea.vmem %s1420_s7, 512  ;;  %p1422_p5 = scmp.lt.s32.totalorder %s1639_s10, %s1420_s7 }
  0x42   : > { %p1417_p9 = pnand %p1415_p7, %p1403_p0  ;;  %p1423_p3 = scmp.lt.s32.totalorder %s1421_s9, %s1414_s28 }
  0x44   : > { %p1418_p13 = pneg %p1417_p9  ;;  %p1424_p4 = por %p1423_p3, %p1422_p5 }
  0x46   : > { %p1425_p8 = pnand %p1424_p4, %p1418_p13 }
  0x48   : > { %1428 = shalt.err (!%p1425_p8)
}
  0x49   : > { %s1504_s13 = smov 128   ;;  %s1505_s14 = smov 8  }
  0x4a   : > { %1259 = dma.hbm_to_vmem [thread:$0]  (!%p1641_p11), %s1637_s8, 256, %s1639_s10, %s1645_s12, %s1504_s13, %s1504_s13, %s1505_s14  }
  0x4b   : > { %p1852_p0 = scmp.ne.s32.totalorder %s1847_s26, 0 }
  0x4c   : > { %s1669_s16 = sand.u32 (!%p1852_p0), 1, %s1489_s19   ;;  %p1853_p4 = scmp.ne.s32.totalorder (!%p1852_p0), %s1845_s24, 0 }
  0x4d   : > { %231 = sbr.rel (%p1852_p0) target bundleno = 574 (0x23e), region = 40  ;;  %s1039_s17 = sshll.u32 (!%p1852_p0), %s1669_s16, 4 }
  0x4e   : > { %s234_s29 = scalar_lea.sflag (!%p1852_p0), [#allocation3], %s1669_s16  ;;  %s1675_s30 = scalar_lea.vmem (!%p1852_p0), [#allocation2], %s1039_s17 }
  0x52   : > { %1472 = dma.done.wait (%p1853_p4), %s234_s29, 256  }
  0x53   : > { %1474 = vsyncadd (%p1853_p4), %s234_s29, 4294967040  ;;  %p1854_p8 = scmp.eq.s32.totalorder %s1563_s22, 0 }
  0x55   : > { %1476 = dma.done.wait (%p1854_p8), [#allocation6], 4608   ;;  %p1855_p3 = pmov %p1854_p8 }
  0x56   : > { %v1506_v0 = vmov 0.0   ;;  %vm1507_vm0 = vmmov 0   ;;  %v275_v1 = vlaneseq  ;;  %v1313_v2 = vld [vmem:[#allocation5 + $0x38] sm:$0xff]   ;;  %v1315_v5 = vld [vmem:[#allocation5 + $0x30] sm:$0xff]   ;;  %v1317_v9 = vld [vmem:[#allocation5 + $0x28] sm:$0xff]   ;;  %vm373_vm5 = vcmask 523264  }
  0x57   : > { %1478 = vsyncadd (%p1855_p3), [#allocation6], 4294962688  ;;  %1141 = vmatprep.subr.bf16.mxu0 %v1506_v0  ;;  %1153 = vmatprep.subr.bf16.mxu1 %v1506_v0  ;;  %v1314_v4 = vld [vmem:[#allocation5 + $0x18] sm:$0xff]   ;;  %v1316_v6 = vld [vmem:[#allocation5 + $0x10] sm:$0xff]   ;;  %vm1508_vm7 = vmmov 1   ;;  %s271_s11 = scalar_lea.vmem [#allocation8], %s1039_s17 }
  0x58   : > { %1149 = vmatprep.mubr.msk.bf16.mxu0 %vm1507_vm0, %v1506_v0  ;;  %1161 = vmatprep.mubr.msk.bf16.mxu1 %vm1507_vm0, %v1506_v0  ;;  %v1691_v3 = vshrl.u32 %v275_v1, 7  ;;  %v1318_v10 = vld [vmem:[#allocation5 + $0x8] sm:$0xff]   ;;  %v306_v12 = vld [vmem:[%s1675_s30] sm:$0xff]  ;;  %v1321_v27 = vld [vmem:[#allocation5 + $0x58] sm:$0xff]   ;;  %s938_s12 = sshll.u32 %s271_s11, 4  ;;  %s1098_s28 = sshll.u32 %s1563_s22, 8  ;;  %s1787_s12 = int_to_ptr.vmem [resolvable:$true] %s938_s12 }
  0x59   : > { %1142 = vmatpush3.bf16.msra.mxu0 %v1313_v2  ;;  %1154 = vmatpush3.bf16.msra.mxu1 %v1314_v4  ;;  %v307_v13 = vld [vmem:[%s1675_s30 + $0x8] sm:$0xff]  ;;  %v308_v15 = vrot.slane %v306_v12, 7  ;;  %v319_v17 = vrot.slane %v306_v12, 1  ;;  %v1319_v19 = vld [vmem:[#allocation5 + $0x20] sm:$0xff]   ;;  %v1322_v31 = vld [vmem:[#allocation5 + $0x50] sm:$0xff]   ;;  %s1792_s9 = scalar_lea.hbm %s1840_s5, %s1098_s28  ;;  %s925_s13 = scalar_lea.sflag [#allocation4], %s1669_s16 }
  0x5a   : > { %1143 = vmatprep.subr.bf16.mxu0 %v1506_v0  ;;  %v277_v7 = vadd.s32 8, %v1691_v3  ;;  %1155 = vmatprep.subr.bf16.mxu1 %v1506_v0  ;;  %v282_v8 = vand.u32 15, %v1691_v3  ;;  %vm310_vm1 = vcmp.lt.s32.totalorder %v1691_v3, 1  ;;  %vm321_vm3 = vcmp.lt.s32.totalorder %v1691_v3, 7  ;;  %v1320_v20 = vld [vmem:[#allocation5] sm:$0xff]   ;;  %v1325_v30 = vld [vmem:[#allocation7 + $0x78] sm:$0xff]  }
  0x5b   : > { %v309_v16 = vrot.slane %v307_v13, 7  ;;  %v320_v18 = vrot.slane %v307_v13, 1  ;;  %v339_v26 = vpack.c.bf16 %v307_v13, %v306_v12  ;;  %v1323_v32 = vld [vmem:[#allocation5 + $0x48] sm:$0xff]   ;;  %v1324_v33 = vld [vmem:[#allocation5 + $0x40] sm:$0xff]   ;;  %v1326_v36 = vld [vmem:[#allocation7 + $0x70] sm:$0xff]   ;;  %s1429_s14 = scalar_lea.vmem %s1787_s12, 256 }
  0x5c   : > { %v289_v11 = vand.u32 15, %v277_v7  ;;  %vm1702_vm2 = vcmp.eq.s32.totalorder %v282_v8, 0  ;;  %v1327_v37 = vld [vmem:[#allocation7 + $0x38] sm:$0xff]   ;;  %v1328_v38 = vld [vmem:[#allocation7 + $0x68] sm:$0xff]   ;;  %v1329_v39 = vld [vmem:[#allocation7 + $0x30] sm:$0xff]   ;;  %p1430_p11 = scmp.ne.s32.totalorder %s1787_s12, %s1429_s14  ;;  %p1860_p10 = scmp.ne.s32.totalorder %s1850_s23, 0 }
  0x5d   : > { %1144 = vmatpush3.bf16.msra.mxu0 %v1315_v5  ;;  %1156 = vmatpush3.bf16.msra.mxu1 %v1316_v6  ;;  %v311_v21 = vsel %vm310_vm1, %v308_v15, %v309_v16  ;;  %v312_v22 = vsel %vm310_vm1, %v309_v16, %v308_v15  ;;  %v323_v25 = vsel %vm321_vm3, %v320_v18, %v319_v17  ;;  %v1330_v40 = vld [vmem:[#allocation7 + $0x60] sm:$0xff]   ;;  %v1331_v41 = vld [vmem:[#allocation7 + $0x28] sm:$0xff]   ;;  %v1332_v42 = vld [vmem:[#allocation7 + $0x58] sm:$0xff]   ;;  %s1509_s22 = smov [#allocation8]  }
  0x5e   : > { %1145 = vmatprep.subr.bf16.mxu0 %v1506_v0  ;;  %1157 = vmatprep.subr.bf16.mxu1 %v1506_v0  ;;  %vm1712_vm4 = vcmp.eq.s32.totalorder %v289_v11, 15  ;;  %v317_v24 = vsel %vm1702_vm2, 0.0, %v312_v22  ;;  %v322_v34 = vsel %vm321_vm3, %v319_v17, %v320_v18  ;;  %v1333_v43 = vld [vmem:[#allocation7 + $0x20] sm:$0xff]   ;;  %v1334_v44 = vld [vmem:[#allocation7 + $0x50] sm:$0xff]   ;;  %v1335_v45 = vld [vmem:[#allocation7 + $0x18] sm:$0xff]   ;;  %p1431_p1 = pnand %p1430_p11, %p1860_p10  ;;  %s1433_s17 = sshll.u32 %s1509_s22, 4  ;;  %s1434_s17 = int_to_ptr.vmem [resolvable:$false] %s1433_s17 }
  0x5f   : > { %v330_v28 = vpack.c.bf16 %v311_v21, %v317_v24  ;;  %v329_v29 = vsel %vm1712_vm4, 0.0, %v323_v25  ;;  %v1336_v46 = vld [vmem:[#allocation7 + $0x48] sm:$0xff]   ;;  %v1337_v47 = vld [vmem:[#allocation7 + $0x10] sm:$0xff]   ;;  %v1338_v48 = vld [vmem:[#allocation7 + $0x40] sm:$0xff]   ;;  %s1435_s29 = scalar_lea.vmem %s1434_s17, 512  ;;  %p1436_p6 = scmp.lt.s32.totalorder %s1787_s12, %s1434_s17 }
  0x60   : > { %v486_v35 = vpack.c.bf16 %v329_v29, %v322_v34  ;;  %v1339_v49 = vld [vmem:[#allocation7 + $0x8] sm:$0xff]   ;;  %v1340_v50 = vld [vmem:[#allocation7] sm:$0xff]   ;;  %vm1075_vm6 = vmneg %vm1702_vm2  ;;  %p1432_p2 = pneg %p1431_p1  ;;  %p1437_p12 = scmp.lt.s32.totalorder %s1435_s29, %s1429_s14 }
  0x61   : > { %1146 = vmatpush3.bf16.msra.mxu0 %v1317_v9  ;;  %1158 = vmatpush3.bf16.msra.mxu1 %v1318_v10  ;;  %v1058_v61 = vld [vmem:[%s1837_s2] ss:$0 sm:$0xff]  ;;  %v1341_v10 = vld [vmem:[#allocation7 + $0xb8] sm:$0xff]   ;;  %vm1076_vm8 = vmpackc.low %vm1508_vm7, %vm1075_vm6 }
  0x62   : > { %1147 = vmatprep.subr.bf16.mxu0 %v1506_v0  ;;  %1159 = vmatprep.subr.bf16.mxu1 %v1506_v0  ;;  %v1342_v18 = vld [vmem:[#allocation7 + $0xb0] sm:$0xff]   ;;  %v1343_v14 = vld [vmem:[#allocation7 + $0xa8] sm:$0xff]   ;;  %vm1087_vm9 = vmneg %vm1712_vm4  ;;  %p1438_p7 = por %p1437_p12, %p1436_p6 }
  0x63   : > { %v1346_v21 = vld [vmem:[#allocation7 + $0x90] sm:$0xff]   ;;  %v1347_v22 = vld [vmem:[#allocation7 + $0x88] sm:$0xff]   ;;  %vm1088_vm10 = vmpackc.low %vm1087_vm9, %vm1508_vm7 }
  0x64   : > { %v1091_v3 = vld [vmem:[%s1839_s4] ss:$0 sm:$0xff]  ;;  %p1439_p9 = pnand %p1438_p7, %p1432_p2 }
  0x65   : > { %1148 = vmatpush3.bf16.msra.mxu0 %v1319_v19  ;;  %1160 = vmatpush3.bf16.msra.mxu1 %v1320_v20  ;;  %v1344_v19 = vld [vmem:[#allocation7 + $0xa0] sm:$0xff]   ;;  %v1345_v20 = vld [vmem:[#allocation7 + $0x98] sm:$0xff]  }
  0x66   : > { %1165 = vmatprep.subr.bf16.mxu0 %v1506_v0  ;;  %1177 = vmatprep.subr.bf16.mxu1 %v1506_v0 }
  0x68   : > { %1150 = vmatmul.mubr.msk.bf16.vlgmr.msra.gmra.mxu0 %vm373_vm5, %v339_v26  ;;  %1162 = vmatmul.mubr.msk.bf16.vlgmr.msra.gmra.mxu1 %vm373_vm5, %v330_v28  ;;  %v1348_v26 = vld [vmem:[#allocation7 + $0x80] sm:$0xff]  }
  0x69   : > { %1166 = vmatpush3.bf16.msra.mxu0 %v1321_v27  ;;  %1173 = vmatprep.mubr.msk.bf16.mxu0 %vm1507_vm0, %v1506_v0 }
  0x6a   : > { %1167 = vmatprep.subr.bf16.mxu0 %v1506_v0  ;;  %1178 = vmatpush3.bf16.msra.mxu1 %v1325_v30 }
  0x6b   : > { %1193 = vmatprep.mubr.msk.bf16.mxu1 %vm1507_vm0, %v1506_v0  ;;  %1179 = vmatprep.subr.bf16.mxu1 %v1506_v0 }
  0x6d   : > { %1168 = vmatpush3.bf16.msra.mxu0 %v1322_v31 }
  0x6e   : > { %1169 = vmatprep.subr.bf16.mxu0 %v1506_v0  ;;  %1180 = vmatpush3.bf16.msra.mxu1 %v1326_v36 }
  0x6f   : > { %1181 = vmatprep.subr.bf16.mxu1 %v1506_v0 }
  0x71   : > { %1170 = vmatpush3.bf16.msra.mxu0 %v1323_v32 }
  0x72   : > { %1171 = vmatprep.subr.bf16.mxu0 %v1506_v0  ;;  %1182 = vmatpush3.bf16.msra.mxu1 %v1328_v38 }
  0x73   : > { %1183 = vmatprep.subr.bf16.mxu1 %v1506_v0 }
  0x75   : > { %1172 = vmatpush3.bf16.msra.mxu0 %v1324_v33 }
  0x76   : > { %1197 = vmatprep.subr.bf16.mxu0 %v1506_v0  ;;  %1184 = vmatpush3.bf16.msra.mxu1 %v1330_v40 }
  0x77   : > { %1185 = vmatprep.subr.bf16.mxu1 %v1506_v0 }
  0x78   : > { %1174 = vmatmul.mubr.msk.bf16.vlgmr.msra.gmra.mxu0 %vm373_vm5, %v486_v35 }
  0x79   : > { %1213 = vmatprep.mubr.msk.bf16.mxu0 %vm1507_vm0, %v1506_v0  ;;  %1198 = vmatpush3.bf16.msra.mxu0 %v1327_v37 }
  0x7a   : > { %1199 = vmatprep.subr.bf16.mxu0 %v1506_v0  ;;  %1186 = vmatpush3.bf16.msra.mxu1 %v1332_v42 }
  0x7b   : > { %1187 = vmatprep.subr.bf16.mxu1 %v1506_v0 }
  0x7d   : > { %1200 = vmatpush3.bf16.msra.mxu0 %v1329_v39 }
  0x7e   : > { %1201 = vmatprep.subr.bf16.mxu0 %v1506_v0  ;;  %1188 = vmatpush3.bf16.msra.mxu1 %v1334_v44 }
  0x7f   : > { %1189 = vmatprep.subr.bf16.mxu1 %v1506_v0 }
  0x81   : > { %1202 = vmatpush3.bf16.msra.mxu0 %v1331_v41 }
  0x82   : > { %1203 = vmatprep.subr.bf16.mxu0 %v1506_v0  ;;  %1190 = vmatpush3.bf16.msra.mxu1 %v1336_v46 }
  0x83   : > { %1191 = vmatprep.subr.bf16.mxu1 %v1506_v0 }
  0x85   : > { %1204 = vmatpush3.bf16.msra.mxu0 %v1333_v43 }
  0x86   : > { %1205 = vmatprep.subr.bf16.mxu0 %v1506_v0  ;;  %1192 = vmatpush3.bf16.msra.mxu1 %v1338_v48 }
  0x87   : > { %1217 = vmatprep.subr.bf16.mxu1 %v1506_v0 }
  0x89   : > { %1206 = vmatpush3.bf16.msra.mxu0 %v1335_v45 }
  0x8a   : > { %1207 = vmatprep.subr.bf16.mxu0 %v1506_v0 }
  0x8d   : > { %1208 = vmatpush3.bf16.msra.mxu0 %v1337_v47 }
  0x8e   : > { %1209 = vmatprep.subr.bf16.mxu0 %v1506_v0 }
  0x91   : > { %1210 = vmatpush3.bf16.msra.mxu0 %v1339_v49 }
  0x92   : > { %1211 = vmatprep.subr.bf16.mxu0 %v1506_v0 }
  0x95   : > { %1212 = vmatpush3.bf16.msra.mxu0 %v1340_v50 }
 0x128   : > { %v411_v51 = vpop.f32.mrf.mxu0  ;;  %v479_v52 = vpop.f32.mrf.mxu1 }
 0x129   : > { %v480_v59 = vadd.f32 %v479_v52, %v411_v51 }
 0x12a   : > { %v1151_v53 = vpop.f32.mrf.mxu0  ;;  %v1163_v54 = vpop.f32.mrf.mxu1 }
 0x12c   : > { %v414_v55 = vpop.f32.mrf.mxu0  ;;  %v482_v56 = vpop.f32.mrf.mxu1 }
 0x12d   : > { %v483_v1 = vadd.f32 %v482_v56, %v414_v55 }
 0x12e   : > { %v1152_v57 = vpop.f32.mrf.mxu0  ;;  %v1164_v58 = vpop.f32.mrf.mxu1 }
 0x138   : > { %v557_v60 = vpop.f32.mrf.mxu0 }
 0x139   : > { %v564_v62 = vadd.f32 %v557_v60, %v480_v59 }
 0x13a   : > { %v1175_v63 = vpop.f32.mrf.mxu0 }
 0x13b   : > { %v573_v2 = vadd.f32 %v1058_v61, %v564_v62 }
 0x13c   : > { %v560_v4 = vpop.f32.mrf.mxu0 }
 0x13d   : > { %v565_v5 = vadd.f32 %v560_v4, %v483_v1  ;;  %v575_v7 = vmax.f32 %v573_v2, 0.0 }
 0x13e   : > { %v1176_v6 = vpop.f32.mrf.mxu0 }
 0x13f   : > { %v574_v8 = vadd.f32 %v1058_v61, %v565_v5  ;;  %v577_v11 = vrot.slane %v575_v7, 7  ;;  %v583_v25 = vrot.slane %v575_v7, 1 }
 0x141   : > { %v576_v9 = vmax.f32 %v574_v8, 0.0 }
 0x143   : > { %v578_v12 = vrot.slane %v576_v9, 7  ;;  %v606_v13 = vpack.c.bf16 %v576_v9, %v575_v7  ;;  %v584_v24 = vrot.slane %v576_v9, 1 }
 0x145   : > { %v579_v15 = vsel %vm310_vm1, %v577_v11, %v578_v12  ;;  %v580_v16 = vsel %vm310_vm1, %v578_v12, %v577_v11  ;;  %1194 = vmatmul.mubr.bf16.vlgmr.msra.gmra.mxu1 %v606_v13  ;;  %v585_v27 = vsel %vm321_vm3, %v583_v25, %v584_v24  ;;  %v586_v28 = vsel %vm321_vm3, %v584_v24, %v583_v25 }
 0x146   : > { %1218 = vmatpush3.bf16.msra.mxu1 %v1341_v10  ;;  %v1077_v17 = vpack.c.bf16 %v579_v15, %v580_v16  ;;  %1233 = vmatprep.mubr.msk.bf16.mxu1 %vm1507_vm0, %v1506_v0  ;;  %v1089_v29 = vpack.c.bf16 %v586_v28, %v585_v27 }
 0x147   : > { %1219 = vmatprep.subr.bf16.mxu1 %v1506_v0 }
 0x148   : > { %1214 = vmatmul.mubr.msk.bf16.vlgmr.msra.gmra.mxu0 %vm1076_vm8, %v1077_v17 }
 0x14a   : > { %1220 = vmatpush3.bf16.msra.mxu1 %v1342_v18 }
 0x14b   : > { %1221 = vmatprep.subr.bf16.mxu1 %v1506_v0 }
 0x14e   : > { %1222 = vmatpush3.bf16.msra.mxu1 %v1343_v14 }
 0x14f   : > { %1223 = vmatprep.subr.bf16.mxu1 %v1506_v0 }
 0x152   : > { %1224 = vmatpush3.bf16.msra.mxu1 %v1344_v19 }
 0x153   : > { %1225 = vmatprep.subr.bf16.mxu1 %v1506_v0 }
 0x156   : > { %1226 = vmatpush3.bf16.msra.mxu1 %v1345_v20 }
 0x157   : > { %1227 = vmatprep.subr.bf16.mxu1 %v1506_v0 }
 0x15a   : > { %1228 = vmatpush3.bf16.msra.mxu1 %v1346_v21 }
 0x15b   : > { %1229 = vmatprep.subr.bf16.mxu1 %v1506_v0 }
 0x15e   : > { %1230 = vmatpush3.bf16.msra.mxu1 %v1347_v22 }
 0x15f   : > { %1231 = vmatprep.subr.bf16.mxu1 %v1506_v0 }
 0x162   : > { %1232 = vmatpush3.bf16.msra.mxu1 %v1348_v26 }
 0x165   : > { %1234 = vmatmul.mubr.msk.bf16.vlgmr.msra.gmra.mxu1 %vm1088_vm10, %v1089_v29 }
 0x205   : > { %v706_v30 = vpop.f32.mrf.mxu1 }
 0x207   : > { %v1195_v31 = vpop.f32.mrf.mxu1 }
 0x208   : > { %v795_v32 = vpop.f32.mrf.mxu0 }
 0x209   : > { %v709_v33 = vpop.f32.mrf.mxu1  ;;  %v796_v36 = vadd.f32 %v795_v32, %v706_v30 }
 0x20a   : > { %v1215_v0 = vpop.f32.mrf.mxu0 }
 0x20b   : > { %v1196_v23 = vpop.f32.mrf.mxu1 }
 0x20c   : > { %v798_v34 = vpop.f32.mrf.mxu0 }
 0x20d   : > { %v799_v40 = vadd.f32 %v798_v34, %v709_v33 }
 0x20e   : > { %v1216_v35 = vpop.f32.mrf.mxu0 }
 0x225   : > { %v902_v37 = vpop.f32.mrf.mxu1 }
 0x226   : > { %v909_v38 = vadd.f32 %v902_v37, %v796_v36 }
 0x227   : > { %v1235_v39 = vpop.f32.mrf.mxu1 }
 0x228   : > { %v918_v41 = vadd.f32 %v1091_v3, %v909_v38 }
 0x229   : > { %v905_v42 = vpop.f32.mrf.mxu1 }
 0x22a   : > { %v920_v43 = vmax.f32 %v918_v41, 0.0  ;;  %v910_v44 = vadd.f32 %v905_v42, %v799_v40 }
 0x22b   : > { %v1236_v45 = vpop.f32.mrf.mxu1 }
 0x22c   : > { %922 = vst [vmem:[%s271_s11] sm:$0xff] %v920_v43  ;;  %v919_v46 = vadd.f32 %v1091_v3, %v910_v44 }
 0x22e   : > { %v921_v47 = vmax.f32 %v919_v46, 0.0 }
 0x230   : > { %923 = vst [vmem:[%s271_s11 + $0x8] sm:$0xff] %v921_v47 }
 0x231   : > { %1442 = shalt.err (!%p1439_p9)
}
 0x232   : > { %s1443_s30 = scalar_lea.hbm %s1792_s9, 256  ;;  %s1447_s8 = scalar_lea.hbm %s1840_s5, 512 }
 0x233   : > { %p1444_p13 = scmp.ne.s32.totalorder %s1792_s9, %s1443_s30  ;;  %p1448_p4 = scmp.lt.s32.totalorder %s1792_s9, %s1840_s5 }
 0x234   : > { %p1449_p8 = scmp.lt.s32.totalorder %s1447_s8, %s1443_s30 }
 0x235   : > { %p1445_p5 = pnand %p1444_p13, %p1860_p10 }
 0x236   : > { %p1450_p3 = por %p1449_p8, %p1448_p4 }
 0x237   : > { %p1446_p0 = pneg %p1445_p5 }
 0x239   : > { %p1451_p11 = pnand %p1450_p3, %p1446_p0 }
 0x23b   : > { %1454 = shalt.err (!%p1451_p11)
}
 0x23c   : > { %s1510_s28 = smov 128   ;;  %s1511_s6 = smov 8  }
 0x23d   : > { %1247 = dma.vmem_to_hbm [thread:$0]  (%p1860_p10), %s1787_s12, 256, %s1792_s9, %s925_s13, %s1510_s28, %s1510_s28, %s1511_s6  }
 0x23e PF: > { %s953_s7 = sand.u32 1, %s1485_s18   ;;  %p1861_p1 = scmp.ne.s32.totalorder %s1846_s25, 0 }
 0x23f   : > { %p1862_p2 = scmp.ge.s32.totalorder %s1497_s21, 2  ;;  %s954_s14 = scalar_lea.sflag [#allocation4], %s953_s7 }
 0x241   : > { %p1261_p6 = pnand %p1862_p2, %p1861_p1 }
 0x243   : > { %p1262_p12 = pneg %p1261_p6 }
 0x245   : > { %1480 = dma.done.wait (%p1262_p12), %s954_s14, 256  }
 0x246   : > { %1482 = vsyncadd (%p1262_p12), %s954_s14, 4294967040  ;;  %p19_p7 = scmp.ge.s32.totalorder %s1614_s15, 4   ;;  %s1863_s18 = smov %s1489_s19 }
 0x247   : > { %s1864_s19 = smov %s1493_s20  ;;  %s1865_s20 = smov %s1630_s27 }
 0x248   : > { %s1866_s21 = smov %s1614_s15  ;;  %21 = sbr.rel (!%p19_p7) target bundleno = 6 (0x6), region = 97 }
 0x24d   :  { %959 = vsyncpa [#allocation3], 1 }
 0x24e   :  { %961 = vsyncpa [#allocation3 + $0x1], 1 }
 0x24f   :  { %962 = vsyncpa [#allocation6], 1 }
 0x250   :  { %963 = vsyncpa [#allocation4], 1 }
 0x251   :  { %965 = vsyncpa [#allocation4 + $0x1], 1 }

</bundles_post_ra>
